<compile_context>
chip_gen: v7x
topology: tpu7x:2x2x1
jax: 0.10.0
libtpu: 0.0.40
codegen_flags: <defaults>
</compile_context>

<pallas_src>
import functools

import jax
import jax.numpy as jnp
from jax.experimental import pallas as pl
from jax.experimental.pallas import tpu as pltpu


# ---------------------------------------------------------------------------
# Kernel: one batch tile per grid step; everything stays in VMEM / vregs
# ---------------------------------------------------------------------------
def _fused_conv_kernel(x_ref, a1_ref, b1_ref, a2_ref, b2_ref, a3_ref, b3_ref,
                       o_ref, *, img_rows):
    x = x_ref[...]                      # (M, P*W*Cin) f32, lane-packed NHWC
    M, L = x.shape
    H = img_rows

    # Row-position masks: built once and reused by all three layers (JAX does
    # not CSE broadcast_in_dim).  `% H` stops the dh rolls from leaking rows
    # across the images folded into this tile.
    row = jax.lax.broadcasted_iota(jnp.int32, (M, L), 0) % H
    is_top = row == 0
    is_bot = row == H - 1

    def conv_bias_relu(h, a_ref, b_ref):
        # One 3x3 'SAME' conv (+ folded-BN bias + ReLU) as a single MXU matmul.
        # dh taps come from row-shifted copies (borders zeroed); the dw shifts,
        # zero column padding, BN scale and image packing are all folded into
        # the banded weight a_ref.  Cast to bf16 BEFORE the lane concat.
        up = jnp.where(is_top, 0.0, pltpu.roll(h, 1, axis=0)).astype(jnp.bfloat16)
        dn = jnp.where(is_bot, 0.0, pltpu.roll(h, M - 1, axis=0)).astype(jnp.bfloat16)
        mid = h.astype(jnp.bfloat16)
        lhs = jnp.concatenate([up, mid, dn], axis=1)          # (M, 3*L) bf16
        acc = jnp.dot(lhs, a_ref[...], preferred_element_type=jnp.float32)
        return jnp.maximum(acc + b_ref[...], 0.0)             # f32 bias + ReLU

    h1 = conv_bias_relu(x, a1_ref, b1_ref)            # conv1[0:3]
    h2 = conv_bias_relu(h1, a2_ref, b2_ref) + x       # conv1[3:6]; residual AFTER ReLU
    o_ref[...] = conv_bias_relu(h2, a3_ref, b3_ref)   # conv2
    # TODO(synk): optionally emit bf16 output (halves HBM writeback; matters
    #   most on v5e) — kept f32 here to match the PyTorch module exactly.


# ---------------------------------------------------------------------------
# Wrapper-side weight / bias preparation (pure JAX glue, runs under jit)
# ---------------------------------------------------------------------------
def _expand_weight(w_hwio, scale, W, P):
    """(3,3,Cin,Cout) HWIO + BN scale -> (3*P*W*Cin, P*W*Cout) bf16 matrix.

    Banded im2col with the BN scale folded in (in f32, before the bf16 cast)
    and P images packed block-diagonally along the lane axis.  Row
    (dh, p, w_in, ci) x column (q, w_out, co) = scale[co]*w[dh, w_in-w_out+1,
    ci, co] when p == q and 0 <= w_in-w_out+1 < 3, else 0 — so one MXU matmul
    of the dh-stacked lane-packed activations performs the full 3x3 'SAME'
    conv with a lane-dense result.
    """
    _, _, Cin, Cout = w_hwio.shape
    w = w_hwio.astype(jnp.float32) * scale.astype(jnp.float32)      # fold BN scale
    d = jnp.arange(W)[:, None] - jnp.arange(W)[None, :] + 1          # w_in - w_out + 1
    sel = (d[None] == jnp.arange(3)[:, None, None]).astype(jnp.float32)   # (3, W, W)
    band = jnp.einsum('xpw,dxio->dpiwo', sel, w)                     # (3, W, Cin, W, Cout)
    band = band.reshape(3, W * Cin, W * Cout)
    eye = jnp.eye(P, dtype=jnp.float32)                              # image packing
    big = jnp.einsum('dkm,pq->dpkqm', band, eye)                     # (3, P, WCin, P, WCout)
    return big.reshape(3 * P * W * Cin, P * W * Cout).astype(jnp.bfloat16)


def _tile_bias(v, W, P):
    """(C,) per-channel bias -> (1, P*W*C) f32 matching the lane-packed layout."""
    return jnp.tile(v.astype(jnp.float32), P * W).reshape(1, -1)


def _pick_lane_pack(N, W, Cin):
    """Pack P images along lanes so the intermediate lane width (P*W*Cin) is a
    multiple of 128 (full vregs for VPU ops, dense MXU output columns)."""
    lane = W * Cin
    if lane % 128 == 0:
        return 1
    P = 1
    while lane * P < 128 and N % (2 * P) == 0:
        P *= 2
    return P if (lane * P) % 128 == 0 else 1


def _pick_batch_tile(N, H, P, target_rows=256, min_rows=128):
    """Images per grid step (multiple of P, divisor of N).

    Prefer >=2 grid steps with >= target_rows matmul rows each (fills the
    v6e/v7x MXU and keeps both v7x TCs busy); fall back to >=2 steps with
    >= min_rows (enough for v5e's 128-wide MXU); else the whole batch.
    """
    cands = [b for b in range(P, N + 1, P) if N % b == 0]
    for b in cands:
        if b < N and (b // P) * H >= target_rows:
            return b
    for b in cands:
        if b < N and (b // P) * H >= min_rows:
            return b
    return N


def fused_conv_block(x_nhwc, params):
    """x_nhwc: (N,H,W,Cin) f32 -> (N,H,W,Cout) f32 via one fused pallas_call."""
    N, H, W, Cin = x_nhwc.shape
    (w1, s1, b1), (w2, s2, b2), (w3, s3, b3) = params
    Cout = w3.shape[-1]

    # ---- static tiling decisions -------------------------------------------
    P = _pick_lane_pack(N, W, Cin)              # images packed along lanes
    B_t = _pick_batch_tile(N, H, P)             # images per grid step
    Np, G_t = N // P, B_t // P                  # packed groups: total / per step
    M = G_t * H                                 # matmul rows per grid step
    L_in, L_out = P * W * Cin, P * W * Cout     # lane widths
    K = 3 * L_in
    n_steps = Np // G_t

    # ---- lane-packed, row-major activation layout: (group*H, P*W*C) ---------
    x_flat = (x_nhwc.reshape(Np, P, H, W * Cin)
              .transpose(0, 2, 1, 3)            # pack P images on the lane axis
              .reshape(Np * H, L_in))

    a1 = _expand_weight(w1, s1, W, P)
    a2 = _expand_weight(w2, s2, W, P)
    a3 = _expand_weight(w3, s3, W, P)
    args = (x_flat,
            a1, _tile_bias(b1, W, P),
            a2, _tile_bias(b2, W, P),
            a3, _tile_bias(b3, W, P))

    def const_spec(shape):
        # Weights/biases never change across grid steps: single-buffer them
        # (only relevant when the grid actually has multiple steps).
        idx = lambda n: (0,) * len(shape)
        if n_steps > 1:
            try:
                return pl.BlockSpec(shape, idx, pipeline_mode=pl.Buffered(1))
            except (AttributeError, TypeError):    # older jax: fall back
                pass
        return pl.BlockSpec(shape, idx)

    in_specs = [
        pl.BlockSpec((M, L_in), lambda n: (n, 0)),            # x batch tile
        const_spec((K, L_in)), const_spec((1, L_in)),         # layer 1 (w, bias)
        const_spec((K, L_in)), const_spec((1, L_in)),         # layer 2
        const_spec((K, L_out)), const_spec((1, L_out)),       # layer 3
    ]

    # Explicit VMEM budget (review: v7x has 64 MiB physical / 32 MiB default).
    est = 2 * (a1.size + a2.size + a3.size)        # bf16 weights
    est += 4 * (2 * L_in + L_out)                  # biases (f32)
    est += 4 * 2 * M * (L_in + L_out)              # x/out blocks, double-buffered
    vmem_limit = int(min(max(4 * est, 32 << 20), 100 << 20))

    out_flat = pl.pallas_call(
        functools.partial(_fused_conv_kernel, img_rows=H),
        out_shape=jax.ShapeDtypeStruct((Np * H, L_out), jnp.float32),
        grid_spec=pltpu.PrefetchScalarGridSpec(
            num_scalar_prefetch=0,
            grid=(n_steps,),
            in_specs=in_specs,
            out_specs=pl.BlockSpec((M, L_out), lambda n: (n, 0)),
        ),
        compiler_params=pltpu.CompilerParams(
            dimension_semantics=("parallel",),     # batch tiles are independent
            vmem_limit_bytes=vmem_limit,
        ),
    )(*args)

    # Unpack the lane-packed images (boundary glue only).
    return (out_flat.reshape(Np, H, P, W, Cout)
            .transpose(0, 2, 1, 3, 4)
            .reshape(N, H, W, Cout))


@jax.jit
def conv_module_forward(x_nchw, params):
    """Full `conv` module forward.  NCHW in/out to match PyTorch.

    The NCHW<->NHWC transposes are boundary glue only; callers that can hold
    NHWC end-to-end should call fused_conv_block directly and skip them.
    """
    x_nhwc = jnp.transpose(x_nchw, (0, 2, 3, 1))
    y = fused_conv_block(x_nhwc, params)
    return jnp.transpose(y, (0, 3, 1, 2))


# ---------------------------------------------------------------------------
# Parameters (synthetic, mirroring the nn.Module shapes) + folded BN
# ---------------------------------------------------------------------------
def _fold_bn(conv_b, gamma, beta, mean, var, eps=1e-5):
    scale = gamma / jnp.sqrt(var + eps)
    bias = (conv_b - mean) * scale + beta
    return scale, bias


def make_params(key, in_ch, out_ch):
    def conv_w(k, ci, co):
        return jax.random.normal(k, (3, 3, ci, co), jnp.float32) * (1.0 / (3 * 3 * ci) ** 0.5)

    keys = jax.random.split(key, 12)
    params = []
    chans = [(in_ch, in_ch), (in_ch, in_ch), (in_ch, out_ch)]
    for i, (ci, co) in enumerate(chans):
        w = conv_w(keys[4 * i + 0], ci, co)
        b = 0.01 * jax.random.normal(keys[4 * i + 1], (co,), jnp.float32)
        gamma = 1.0 + 0.1 * jax.random.normal(keys[4 * i + 2], (co,), jnp.float32)
        beta = 0.1 * jax.random.normal(keys[4 * i + 3], (co,), jnp.float32)
        mean = jnp.zeros((co,), jnp.float32)
        var = jnp.ones((co,), jnp.float32)
        scale, bias = _fold_bn(b, gamma, beta, mean, var)
        params.append((w, scale, bias))
    return params


# ---------------------------------------------------------------------------
# Pure-JAX reference (f32) for a correctness sanity check
# ---------------------------------------------------------------------------
@jax.jit
def _reference_forward(x_nchw, params):
    def layer(h, w, s, b):
        y = jax.lax.conv_general_dilated(
            h, w, window_strides=(1, 1), padding='SAME',
            dimension_numbers=('NHWC', 'HWIO', 'NHWC'),
            precision=jax.lax.Precision.HIGHEST)
        return jnp.maximum(y * s + b, 0.0)

    (w1, s1, b1), (w2, s2, b2), (w3, s3, b3) = params
    x = jnp.transpose(x_nchw, (0, 2, 3, 1))
    h = layer(x, w1, s1, b1)
    h = layer(h, w2, s2, b2) + x
    y = layer(h, w3, s3, b3)
    return jnp.transpose(y, (0, 3, 1, 2))


if __name__ == "__main__":
    key = jax.random.PRNGKey(0)
    k_x, k_p = jax.random.split(key)

    in_ch, out_ch = 4, 8
    x = jax.random.normal(k_x, (2, in_ch, 16, 16), jnp.float32)   # NCHW like PyTorch
    params = make_params(k_p, in_ch, out_ch)

    out = conv_module_forward(x, params)
    jax.block_until_ready(out)
    assert out.shape == (2, out_ch, 16, 16), out.shape

    ref = _reference_forward(x, params)
    err = float(jnp.max(jnp.abs(out - ref)))
    assert err < 0.25, f"max abs error vs f32 reference too large: {err}"

    print("KERNEL_OK")
</pallas_src>

<mosaic_0001>
module attributes {stable_mosaic.version = 11 : i64} {
  func.func @_fused_conv_kernel(%arg0: i32, %arg1: memref<16x128xf32, #tpu.memory_space<vmem>>, %arg2: memref<384x128xbf16, #tpu.memory_space<vmem>>, %arg3: memref<1x128xf32, #tpu.memory_space<vmem>>, %arg4: memref<384x128xbf16, #tpu.memory_space<vmem>>, %arg5: memref<1x128xf32, #tpu.memory_space<vmem>>, %arg6: memref<384x256xbf16, #tpu.memory_space<vmem>>, %arg7: memref<1x256xf32, #tpu.memory_space<vmem>>, %arg8: memref<16x256xf32, #tpu.memory_space<vmem>>) attributes {dimension_semantics = [#tpu.dimension_semantics<parallel>], iteration_bounds = array<i64: 1>, scalar_prefetch = 0 : i64, scratch_operands = 0 : i64, tpu.core_type = #tpu.core_type<tc>, window_params = [{transform_indices = @transform_0, window_bounds = array<i64: 16, 128>}, {pipeline_mode = #tpu.pipeline_mode<synchronous>, transform_indices = @transform_1, window_bounds = array<i64: 384, 128>}, {pipeline_mode = #tpu.pipeline_mode<synchronous>, transform_indices = @transform_2, window_bounds = array<i64: 1, 128>}, {pipeline_mode = #tpu.pipeline_mode<synchronous>, transform_indices = @transform_3, window_bounds = array<i64: 384, 128>}, {pipeline_mode = #tpu.pipeline_mode<synchronous>, transform_indices = @transform_4, window_bounds = array<i64: 1, 128>}, {pipeline_mode = #tpu.pipeline_mode<synchronous>, transform_indices = @transform_5, window_bounds = array<i64: 384, 256>}, {pipeline_mode = #tpu.pipeline_mode<synchronous>, transform_indices = @transform_6, window_bounds = array<i64: 1, 256>}, {transform_indices = @transform_7, window_bounds = array<i64: 16, 256>}]} {
    %c0 = arith.constant 0 : index
    %c0_0 = arith.constant 0 : index
    %0 = vector.load %arg1[%c0, %c0_0] : memref<16x128xf32, #tpu.memory_space<vmem>>, vector<16x128xf32>
    %1 = tpu.iota {dimensions = array<i32: 0>} : vector<16x128xi32>
    %c16_i32 = arith.constant 16 : i32
    %c0_i32 = arith.constant 0 : i32
    %2 = arith.cmpi eq, %c16_i32, %c0_i32 : i32
    %c1_i32 = arith.constant 1 : i32
    %3 = arith.select %2, %c1_i32, %c16_i32 : i32
    %4 = vector.broadcast %3 : i32 to vector<16x128xi32>
    %5 = arith.remsi %1, %4 : vector<16x128xi32>
    %c0_i32_1 = arith.constant 0 : i32
    %6 = vector.broadcast %c0_i32_1 : i32 to vector<16x128xi32>
    %7 = arith.cmpi ne, %5, %6 : vector<16x128xi32>
    %c0_i32_2 = arith.constant 0 : i32
    %8 = vector.broadcast %c0_i32_2 : i32 to vector<16x128xi32>
    %9 = arith.cmpi slt, %5, %8 : vector<16x128xi32>
    %c0_i32_3 = arith.constant 0 : i32
    %10 = arith.cmpi slt, %3, %c0_i32_3 : i32
    %11 = vector.broadcast %10 : i1 to vector<16x128xi1>
    %12 = vector.broadcast %11 : vector<16x128xi1> to vector<16x128xi1>
    %13 = arith.xori %9, %12 : vector<16x128xi1>
    %14 = arith.andi %13, %7 : vector<16x128xi1>
    %15 = vector.broadcast %3 : i32 to vector<16x128xi32>
    %16 = arith.addi %5, %15 : vector<16x128xi32>
    %17 = arith.select %14, %16, %5 : vector<16x128xi1>, vector<16x128xi32>
    %c0_i32_4 = arith.constant 0 : i32
    %18 = vector.broadcast %c0_i32_4 : i32 to vector<16x128xi32>
    %19 = arith.cmpi eq, %17, %18 : vector<16x128xi32>
    %c15_i32 = arith.constant 15 : i32
    %20 = vector.broadcast %c15_i32 : i32 to vector<16x128xi32>
    %21 = arith.cmpi eq, %17, %20 : vector<16x128xi32>
    %c1_i32_5 = arith.constant 1 : i32
    %22 = tpu.dynamic_rotate %0 by %c1_i32_5 dim 0 : vector<16x128xf32>, i32 -> vector<16x128xf32>
    %cst = arith.constant 0.000000e+00 : f32
    %23 = vector.broadcast %cst : f32 to vector<16x128xf32>
    %24 = arith.select %19, %23, %22 : vector<16x128xi1>, vector<16x128xf32>
    %25 = arith.truncf %24 : vector<16x128xf32> to vector<16x128xbf16>
    %c15_i32_6 = arith.constant 15 : i32
    %26 = tpu.dynamic_rotate %0 by %c15_i32_6 dim 0 : vector<16x128xf32>, i32 -> vector<16x128xf32>
    %cst_7 = arith.constant 0.000000e+00 : f32
    %27 = vector.broadcast %cst_7 : f32 to vector<16x128xf32>
    %28 = arith.select %21, %27, %26 : vector<16x128xi1>, vector<16x128xf32>
    %29 = arith.truncf %28 : vector<16x128xf32> to vector<16x128xbf16>
    %30 = arith.truncf %0 : vector<16x128xf32> to vector<16x128xbf16>
    %31 = tpu.concatenate %25, %30, %29 in 1 : vector<16x128xbf16>, vector<16x128xbf16>, vector<16x128xbf16> -> vector<16x384xbf16>
    %c0_8 = arith.constant 0 : index
    %c0_9 = arith.constant 0 : index
    %32 = vector.load %arg2[%c0_8, %c0_9] : memref<384x128xbf16, #tpu.memory_space<vmem>>, vector<384x128xbf16>
    %cst_10 = arith.constant dense<0.000000e+00> : vector<16x128xf32>
    %33 = tpu.matmul %31, %32, %cst_10 {dimension_numbers = #tpu.dot_dimension_numbers<[1], [0], [0], [1], [0, 0, 1, 1], [], []>} : vector<16x384xbf16>, vector<384x128xbf16>, vector<16x128xf32> -> vector<16x128xf32>
    %c0_11 = arith.constant 0 : index
    %c0_12 = arith.constant 0 : index
    %34 = vector.load %arg3[%c0_11, %c0_12] : memref<1x128xf32, #tpu.memory_space<vmem>>, vector<1x128xf32>
    %35 = vector.broadcast %34 : vector<1x128xf32> to vector<16x128xf32>
    %36 = arith.addf %33, %35 : vector<16x128xf32>
    %cst_13 = arith.constant 0.000000e+00 : f32
    %37 = vector.broadcast %cst_13 : f32 to vector<16x128xf32>
    %38 = arith.maximumf %36, %37 : vector<16x128xf32>
    %c1_i32_14 = arith.constant 1 : i32
    %39 = tpu.dynamic_rotate %38 by %c1_i32_14 dim 0 : vector<16x128xf32>, i32 -> vector<16x128xf32>
    %cst_15 = arith.constant 0.000000e+00 : f32
    %40 = vector.broadcast %cst_15 : f32 to vector<16x128xf32>
    %41 = arith.select %19, %40, %39 : vector<16x128xi1>, vector<16x128xf32>
    %42 = arith.truncf %41 : vector<16x128xf32> to vector<16x128xbf16>
    %c15_i32_16 = arith.constant 15 : i32
    %43 = tpu.dynamic_rotate %38 by %c15_i32_16 dim 0 : vector<16x128xf32>, i32 -> vector<16x128xf32>
    %cst_17 = arith.constant 0.000000e+00 : f32
    %44 = vector.broadcast %cst_17 : f32 to vector<16x128xf32>
    %45 = arith.select %21, %44, %43 : vector<16x128xi1>, vector<16x128xf32>
    %46 = arith.truncf %45 : vector<16x128xf32> to vector<16x128xbf16>
    %47 = arith.truncf %38 : vector<16x128xf32> to vector<16x128xbf16>
    %48 = tpu.concatenate %42, %47, %46 in 1 : vector<16x128xbf16>, vector<16x128xbf16>, vector<16x128xbf16> -> vector<16x384xbf16>
    %c0_18 = arith.constant 0 : index
    %c0_19 = arith.constant 0 : index
    %49 = vector.load %arg4[%c0_18, %c0_19] : memref<384x128xbf16, #tpu.memory_space<vmem>>, vector<384x128xbf16>
    %cst_20 = arith.constant dense<0.000000e+00> : vector<16x128xf32>
    %50 = tpu.matmul %48, %49, %cst_20 {dimension_numbers = #tpu.dot_dimension_numbers<[1], [0], [0], [1], [0, 0, 1, 1], [], []>} : vector<16x384xbf16>, vector<384x128xbf16>, vector<16x128xf32> -> vector<16x128xf32>
    %c0_21 = arith.constant 0 : index
    %c0_22 = arith.constant 0 : index
    %51 = vector.load %arg5[%c0_21, %c0_22] : memref<1x128xf32, #tpu.memory_space<vmem>>, vector<1x128xf32>
    %52 = vector.broadcast %51 : vector<1x128xf32> to vector<16x128xf32>
    %53 = arith.addf %50, %52 : vector<16x128xf32>
    %cst_23 = arith.constant 0.000000e+00 : f32
    %54 = vector.broadcast %cst_23 : f32 to vector<16x128xf32>
    %55 = arith.maximumf %53, %54 : vector<16x128xf32>
    %56 = arith.addf %55, %0 : vector<16x128xf32>
    %c1_i32_24 = arith.constant 1 : i32
    %57 = tpu.dynamic_rotate %56 by %c1_i32_24 dim 0 : vector<16x128xf32>, i32 -> vector<16x128xf32>
    %cst_25 = arith.constant 0.000000e+00 : f32
    %58 = vector.broadcast %cst_25 : f32 to vector<16x128xf32>
    %59 = arith.select %19, %58, %57 : vector<16x128xi1>, vector<16x128xf32>
    %60 = arith.truncf %59 : vector<16x128xf32> to vector<16x128xbf16>
    %c15_i32_26 = arith.constant 15 : i32
    %61 = tpu.dynamic_rotate %56 by %c15_i32_26 dim 0 : vector<16x128xf32>, i32 -> vector<16x128xf32>
    %cst_27 = arith.constant 0.000000e+00 : f32
    %62 = vector.broadcast %cst_27 : f32 to vector<16x128xf32>
    %63 = arith.select %21, %62, %61 : vector<16x128xi1>, vector<16x128xf32>
    %64 = arith.truncf %63 : vector<16x128xf32> to vector<16x128xbf16>
    %65 = arith.truncf %56 : vector<16x128xf32> to vector<16x128xbf16>
    %66 = tpu.concatenate %60, %65, %64 in 1 : vector<16x128xbf16>, vector<16x128xbf16>, vector<16x128xbf16> -> vector<16x384xbf16>
    %c0_28 = arith.constant 0 : index
    %c0_29 = arith.constant 0 : index
    %67 = vector.load %arg6[%c0_28, %c0_29] : memref<384x256xbf16, #tpu.memory_space<vmem>>, vector<384x256xbf16>
    %cst_30 = arith.constant dense<0.000000e+00> : vector<16x256xf32>
    %68 = tpu.matmul %66, %67, %cst_30 {dimension_numbers = #tpu.dot_dimension_numbers<[1], [0], [0], [1], [0, 0, 1, 1], [], []>} : vector<16x384xbf16>, vector<384x256xbf16>, vector<16x256xf32> -> vector<16x256xf32>
    %c0_31 = arith.constant 0 : index
    %c0_32 = arith.constant 0 : index
    %69 = vector.load %arg7[%c0_31, %c0_32] : memref<1x256xf32, #tpu.memory_space<vmem>>, vector<1x256xf32>
    %70 = vector.broadcast %69 : vector<1x256xf32> to vector<16x256xf32>
    %71 = arith.addf %68, %70 : vector<16x256xf32>
    %cst_33 = arith.constant 0.000000e+00 : f32
    %72 = vector.broadcast %cst_33 : f32 to vector<16x256xf32>
    %73 = arith.maximumf %71, %72 : vector<16x256xf32>
    %c0_34 = arith.constant 0 : index
    %c0_35 = arith.constant 0 : index
    %74 = vector.load %arg8[%c0_34, %c0_35] : memref<16x256xf32, #tpu.memory_space<vmem>>, vector<16x256xf32>
    tpu.vector_store %arg8[%c0_34, %c0_35], %73 {strides = array<i32>} : memref<16x256xf32, #tpu.memory_space<vmem>>, vector<16x256xf32>,
    return
  }
  func.func @transform_0(%arg0: i32) -> (i32, i32) {
    %c0_i32 = arith.constant 0 : i32
    %c0_i32_0 = arith.constant 0 : i32
    return %arg0, %c0_i32 : i32, i32
  }
  func.func @transform_1(%arg0: i32) -> (i32, i32) {
    %c0_i32 = arith.constant 0 : i32
    %c0_i32_0 = arith.constant 0 : i32
    %c0_i32_1 = arith.constant 0 : i32
    return %c0_i32, %c0_i32_0 : i32, i32
  }
  func.func @transform_2(%arg0: i32) -> (i32, i32) {
    %c0_i32 = arith.constant 0 : i32
    %c0_i32_0 = arith.constant 0 : i32
    %c0_i32_1 = arith.constant 0 : i32
    return %c0_i32, %c0_i32_0 : i32, i32
  }
  func.func @transform_3(%arg0: i32) -> (i32, i32) {
    %c0_i32 = arith.constant 0 : i32
    %c0_i32_0 = arith.constant 0 : i32
    %c0_i32_1 = arith.constant 0 : i32
    return %c0_i32, %c0_i32_0 : i32, i32
  }
  func.func @transform_4(%arg0: i32) -> (i32, i32) {
    %c0_i32 = arith.constant 0 : i32
    %c0_i32_0 = arith.constant 0 : i32
    %c0_i32_1 = arith.constant 0 : i32
    return %c0_i32, %c0_i32_0 : i32, i32
  }
  func.func @transform_5(%arg0: i32) -> (i32, i32) {
    %c0_i32 = arith.constant 0 : i32
    %c0_i32_0 = arith.constant 0 : i32
    %c0_i32_1 = arith.constant 0 : i32
    return %c0_i32, %c0_i32_0 : i32, i32
  }
  func.func @transform_6(%arg0: i32) -> (i32, i32) {
    %c0_i32 = arith.constant 0 : i32
    %c0_i32_0 = arith.constant 0 : i32
    %c0_i32_1 = arith.constant 0 : i32
    return %c0_i32, %c0_i32_0 : i32, i32
  }
  func.func @transform_7(%arg0: i32) -> (i32, i32) {
    %c0_i32 = arith.constant 0 : i32
    %c0_i32_0 = arith.constant 0 : i32
    return %arg0, %c0_i32 : i32, i32
  }
}

</mosaic_0001>

<bundles_post_ra>
// kernel: tile.28
= control target key start
LH: loop header
LB: loop body
LE: loop exit
PB: predicated region body
PF: predicated region fallthrough
CT: control target
= control target key end

     0   :  { %s40_s0 = inlined_call_operand.vmem [shape: f32[8], index: 0, kind: input, shape index: {}]   ;;  %s41_s1 = inlined_call_operand.vmem [shape: f32[32,8], index: 1, kind: output, shape index: {}]  }
   0x1   :  { %v4_v0 = vld [vmem:[%s40_s0] ss:$0 sm:$0xff] }
   0x2   :  { %5 = vst [vmem:[%s41_s1] sm:$0xff] %v4_v0  ;;  %12 = vst [vmem:[%s41_s1 + $0x8] sm:$0xff] %v4_v0 }
   0x3   :  { %13 = vst [vmem:[%s41_s1 + $0x10] sm:$0xff] %v4_v0  ;;  %14 = vst [vmem:[%s41_s1 + $0x18] sm:$0xff] %v4_v0 }

// kernel: tile.29
= control target key start
LH: loop header
LB: loop body
LE: loop exit
PB: predicated region body
PF: predicated region fallthrough
CT: control target
= control target key end

     0   :  { %s7_s6 = smov 3  ;;  %s21_s9 = smov 3  ;;  %vm4_vm0 = vcmask 64512   ;;  %vm11_vm1 = vcmask 1048512   ;;  %vm18_vm2 = vcmask 982912   ;;  %vm25_vm3 = vcmask 917312   ;;  %s232_s0 = inlined_call_operand.vmem [shape: f32[32,8], index: 0, kind: input, shape index: {}]   ;;  %s233_s1 = inlined_call_operand.vmem [shape: f32[1,256], index: 1, kind: output, shape index: {}]  }
   0x1   :  { %v122_v0 = vld [vmem:[%s232_s0 + $0xf] ss:$16 sm:%s7_s6]   ;;  %s153_s10 = smov 120   ;;  %v124_v1 = vld [vmem:[%s232_s0 + $0xd] ss:$16 sm:%s21_s9]   ;;  %s14_s13 = smov 3 }
   0x2   :  { %9 = vrot.lane.b32.xlu0 %v122_v0, %s153_s10  ;;  %s154_s14 = smov 104   ;;  %v123_v2 = vld [vmem:[%s232_s0 + $0xe] ss:$16 sm:%s14_s13]   ;;  %s28_s17 = smov 3  ;;  %vm32_vm4 = vcmask 851712   ;;  %vm39_vm5 = vcmask 786112  }
   0x3   :  { %23 = vrot.lane.b32.xlu1 %v124_v1, %s154_s14  ;;  %v125_v3 = vld [vmem:[%s232_s0 + $0xc] ss:$16 sm:%s28_s17]   ;;  %s35_s20 = smov 3  ;;  %s42_s21 = smov 3  ;;  %vm46_vm6 = vcmask 720512   ;;  %vm53_vm7 = vcmask 654912  }
   0x4   :  { %s155_s22 = smov 112   ;;  %s156_s23 = smov 96   ;;  %v126_v4 = vld [vmem:[%s232_s0 + $0xb] ss:$16 sm:%s35_s20]   ;;  %v127_v5 = vld [vmem:[%s232_s0 + $0xa] ss:$16 sm:%s42_s21]  }
   0x5   :  { %s49_s28 = smov 3  ;;  %s56_s29 = smov 3  ;;  %vm60_vm8 = vcmask 589312   ;;  %vm67_vm9 = vcmask 523712   ;;  %vm74_vm10 = vcmask 458112   ;;  %vm81_vm11 = vcmask 392512  }
   0x6   :  { %16 = vrot.lane.b32.xlu0 %v123_v2, %s155_s22  ;;  %s157_s30 = smov 88   ;;  %s158_s2 = smov 80   ;;  %v128_v6 = vld [vmem:[%s232_s0 + $0x9] ss:$16 sm:%s49_s28]   ;;  %vm88_vm12 = vcmask 326912   ;;  %vm95_vm13 = vcmask 261312  }
   0x7   :  { %30 = vrot.lane.b32.xlu1 %v125_v3, %s156_s23  ;;  %v129_v7 = vld [vmem:[%s232_s0 + $0x8] ss:$16 sm:%s56_s29]   ;;  %s63_s7 = smov 3  ;;  %s70_s8 = smov 3  ;;  %vm102_vm14 = vcmask 195712   ;;  %vm109_vm15 = vcmask 130112  }
   0x8   :  { %s159_s9 = smov 72   ;;  %s160_s10 = smov 64   ;;  %v130_v8 = vld [vmem:[%s232_s0 + $0x7] ss:$16 sm:%s63_s7]   ;;  %v131_v9 = vld [vmem:[%s232_s0 + $0x6] ss:$16 sm:%s70_s8]  }
   0x9   :  { %s2_s13 = smov 3  ;;  %s77_s16 = smov 3 }
   0xa   :  { %37 = vrot.lane.b32.xlu0 %v126_v4, %s157_s30  ;;  %v3_v10 = vld [vmem:[%s232_s0] ss:$16 sm:%s2_s13]   ;;  %s84_s19 = smov 3  ;;  %s161_s20 = smov 56  }
   0xb   :  { %44 = vrot.lane.b32.xlu1 %v127_v5, %s158_s2  ;;  %5 = vst.msk [vmem:[#allocation0] ss:$8 sm:$0x3] %vm4_vm0, %v3_v10   ;;  %s162_s21 = smov 48   ;;  %v132_v11 = vld [vmem:[%s232_s0 + $0x5] ss:$16 sm:%s77_s16]  }
   0xc   :  { %v133_v12 = vld [vmem:[%s232_s0 + $0x4] ss:$16 sm:%s84_s19]   ;;  %s91_s26 = smov 3  ;;  %s98_s27 = smov 3 }
   0xd   :  { %s163_s28 = smov 40   ;;  %s164_s29 = smov 32   ;;  %v134_v13 = vld [vmem:[%s232_s0 + $0x3] ss:$16 sm:%s91_s26]   ;;  %v135_v14 = vld [vmem:[%s232_s0 + $0x2] ss:$16 sm:%s98_s27]  }
   0xe   :  { %51 = vrot.lane.b32.xlu0 %v128_v6, %s159_s9  ;;  %s105_s5 = smov 3  ;;  %s165_s6 = smov 24  }
   0xf   :  { %58 = vrot.lane.b32.xlu1 %v129_v7, %s160_s10  ;;  %s166_s7 = smov 16   ;;  %v136_v15 = vld [vmem:[%s232_s0 + $0x1] ss:$16 sm:%s105_s5]   ;;  %s167_s0 = smov 8  }
  0x12   :  { %65 = vrot.lane.b32.xlu0 %v130_v8, %s161_s20 }
  0x13   :  { %72 = vrot.lane.b32.xlu1 %v131_v9, %s162_s21 }
  0x16   :  { %79 = vrot.lane.b32.xlu0 %v132_v11, %s163_s28 }
  0x17   :  { %86 = vrot.lane.b32.xlu1 %v133_v12, %s164_s29 }
  0x1a   :  { %93 = vrot.lane.b32.xlu0 %v134_v13, %s165_s6 }
  0x1b   :  { %100 = vrot.lane.b32.xlu1 %v135_v14, %s166_s7 }
  0x1e   :  { %107 = vrot.lane.b32.xlu0 %v136_v15, %s167_s0 }
  0x74   :  { %v10_v16 = vpop.permute.xlu0 %9  }
  0x75   :  { %12 = vst.msk [vmem:[#allocation0] ss:$8 sm:$0x3] %vm11_vm1, %v10_v16   ;;  %v24_v17 = vpop.permute.xlu1 %23  }
  0x78   :  { %v17_v18 = vpop.permute.xlu0 %16  }
  0x79   :  { %19 = vst.msk [vmem:[#allocation0] ss:$8 sm:$0x3] %vm18_vm2, %v17_v18   ;;  %v31_v19 = vpop.permute.xlu1 %30  }
  0x7a   :  { %26 = vst.msk [vmem:[#allocation0] ss:$8 sm:$0x3] %vm25_vm3, %v24_v17  }
  0x7b   :  { %33 = vst.msk [vmem:[#allocation0] ss:$8 sm:$0x3] %vm32_vm4, %v31_v19  }
  0x7c   :  { %v38_v20 = vpop.permute.xlu0 %37  }
  0x7d   :  { %40 = vst.msk [vmem:[#allocation0] ss:$8 sm:$0x3] %vm39_vm5, %v38_v20   ;;  %v45_v21 = vpop.permute.xlu1 %44  }
  0x7e   :  { %47 = vst.msk [vmem:[#allocation0] ss:$8 sm:$0x3] %vm46_vm6, %v45_v21  }
  0x80   :  { %v52_v22 = vpop.permute.xlu0 %51  }
  0x81   :  { %54 = vst.msk [vmem:[#allocation0] ss:$8 sm:$0x3] %vm53_vm7, %v52_v22   ;;  %v59_v23 = vpop.permute.xlu1 %58  }
  0x82   :  { %61 = vst.msk [vmem:[#allocation0] ss:$8 sm:$0x3] %vm60_vm8, %v59_v23  }
  0x84   :  { %v66_v24 = vpop.permute.xlu0 %65  }
  0x85   :  { %68 = vst.msk [vmem:[#allocation0] ss:$8 sm:$0x3] %vm67_vm9, %v66_v24   ;;  %v73_v25 = vpop.permute.xlu1 %72  }
  0x86   :  { %75 = vst.msk [vmem:[#allocation0] ss:$8 sm:$0x3] %vm74_vm10, %v73_v25  }
  0x88   :  { %v80_v26 = vpop.permute.xlu0 %79  }
  0x89   :  { %82 = vst.msk [vmem:[#allocation0] ss:$8 sm:$0x3] %vm81_vm11, %v80_v26   ;;  %v87_v27 = vpop.permute.xlu1 %86  }
  0x8a   :  { %89 = vst.msk [vmem:[#allocation0] ss:$8 sm:$0x3] %vm88_vm12, %v87_v27  }
  0x8c   :  { %v94_v28 = vpop.permute.xlu0 %93  }
  0x8d   :  { %96 = vst.msk [vmem:[#allocation0] ss:$8 sm:$0x3] %vm95_vm13, %v94_v28   ;;  %v101_v29 = vpop.permute.xlu1 %100  }
  0x8e   :  { %103 = vst.msk [vmem:[#allocation0] ss:$8 sm:$0x3] %vm102_vm14, %v101_v29  }
  0x90   :  { %v108_v30 = vpop.permute.xlu0 %107  }
  0x91   :  { %110 = vst.msk [vmem:[#allocation0] ss:$8 sm:$0x3] %vm109_vm15, %v108_v30  }
  0x98   :  { %v114_v31 = vld [vmem:[#allocation0] sm:$0x1]  ;;  %v118_v32 = vld [vmem:[#allocation0 + $0x8] sm:$0x1] }
  0x99   :  { %116 = vst [vmem:[%s233_s1] sm:$0x1] %v114_v31  ;;  %137 = vst [vmem:[%s233_s1 + $0x1] sm:$0x1] %v118_v32 }

// kernel: tile.18
= control target key start
LH: loop header
LB: loop body
LE: loop exit
PB: predicated region body
PF: predicated region fallthrough
CT: control target
= control target key end

     0   :  { %s40_s0 = inlined_call_operand.vmem [shape: f32[4], index: 0, kind: input, shape index: {}]   ;;  %s41_s1 = inlined_call_operand.vmem [shape: f32[32,4], index: 1, kind: output, shape index: {}]  }
   0x1   :  { %v4_v0 = vld [vmem:[%s40_s0] ss:$0 sm:$0xff] }
   0x2   :  { %5 = vst [vmem:[%s41_s1] sm:$0xff] %v4_v0  ;;  %12 = vst [vmem:[%s41_s1 + $0x8] sm:$0xff] %v4_v0 }
   0x3   :  { %13 = vst [vmem:[%s41_s1 + $0x10] sm:$0xff] %v4_v0  ;;  %14 = vst [vmem:[%s41_s1 + $0x18] sm:$0xff] %v4_v0 }

// kernel: tile.19
= control target key start
LH: loop header
LB: loop body
LE: loop exit
PB: predicated region body
PF: predicated region fallthrough
CT: control target
= control target key end

     0   :  { %s259_s10 = smov 124   ;;  %s260_s11 = smov 116   ;;  %vm3_vm0 = vcmask 31744   ;;  %vm9_vm1 = vcmask 1048544   ;;  %vm15_vm2 = vcmask 1015744   ;;  %vm21_vm3 = vcmask 982944   ;;  %s399_s0 = inlined_call_operand.vmem [shape: f32[32,4], index: 0, kind: input, shape index: {}]   ;;  %s400_s1 = inlined_call_operand.vmem [shape: f32[1,128], index: 1, kind: output, shape index: {}]  }
   0x1   :  { %v197_v0 = vld [vmem:[%s399_s0 + $0x1f] sm:$0x1]   ;;  %v199_v1 = vld [vmem:[%s399_s0 + $0x1d] sm:$0x1]   ;;  %v198_v2 = vld [vmem:[%s399_s0 + $0x1e] sm:$0x1]  }
   0x2   :  { %7 = vrot.lane.b32.xlu0 %v197_v0, %s259_s10  ;;  %19 = vrot.lane.b32.xlu1 %v199_v1, %s260_s11  ;;  %v200_v3 = vld [vmem:[%s399_s0 + $0x1c] sm:$0x1]   ;;  %s261_s16 = smov 120   ;;  %s262_s17 = smov 112   ;;  %v201_v4 = vld [vmem:[%s399_s0 + $0x1b] sm:$0x1]  }
   0x3   :  { %v202_v5 = vld [vmem:[%s399_s0 + $0x1a] sm:$0x1]   ;;  %s263_s22 = smov 108   ;;  %s264_s23 = smov 104   ;;  %v203_v6 = vld [vmem:[%s399_s0 + $0x19] sm:$0x1]  }
   0x4   :  { %v204_v7 = vld [vmem:[%s399_s0 + $0x18] sm:$0x1]   ;;  %s265_s28 = smov 100   ;;  %s266_s29 = smov 96   ;;  %v205_v8 = vld [vmem:[%s399_s0 + $0x17] sm:$0x1]  }
   0x5   :  { %v206_v9 = vld [vmem:[%s399_s0 + $0x16] sm:$0x1]   ;;  %v2_v10 = vld [vmem:[%s399_s0] sm:$0x1]   ;;  %s267_s7 = smov 92   ;;  %s268_s8 = smov 88  }
   0x6   :  { %13 = vrot.lane.b32.xlu0 %v198_v2, %s261_s16  ;;  %25 = vrot.lane.b32.xlu1 %v200_v3, %s262_s17  ;;  %4 = vst.msk [vmem:[#allocation0] sm:$0x1] %vm3_vm0, %v2_v10   ;;  %v207_v11 = vld [vmem:[%s399_s0 + $0x15] sm:$0x1]   ;;  %v208_v12 = vld [vmem:[%s399_s0 + $0x14] sm:$0x1]  }
   0x7   :  { %s269_s13 = smov 84   ;;  %s270_s14 = smov 80   ;;  %v209_v13 = vld [vmem:[%s399_s0 + $0x13] sm:$0x1]   ;;  %v210_v14 = vld [vmem:[%s399_s0 + $0x12] sm:$0x1]  }
   0x8   :  { %s271_s19 = smov 76   ;;  %s272_s20 = smov 72   ;;  %v211_v15 = vld [vmem:[%s399_s0 + $0x11] sm:$0x1]   ;;  %v212_v16 = vld [vmem:[%s399_s0 + $0x10] sm:$0x1]  }
   0x9   :  { %s273_s25 = smov 68   ;;  %s274_s26 = smov 64   ;;  %v213_v17 = vld [vmem:[%s399_s0 + $0xf] sm:$0x1]   ;;  %v214_v18 = vld [vmem:[%s399_s0 + $0xe] sm:$0x1]  }
   0xa   :  { %31 = vrot.lane.b32.xlu0 %v201_v4, %s263_s22  ;;  %37 = vrot.lane.b32.xlu1 %v202_v5, %s264_s23  ;;  %s275_s2 = smov 60   ;;  %s276_s3 = smov 56   ;;  %v215_v19 = vld [vmem:[%s399_s0 + $0xd] sm:$0x1]   ;;  %v216_v20 = vld [vmem:[%s399_s0 + $0xc] sm:$0x1]  }
   0xb   :  { %s278_s9 = smov 48   ;;  %v217_v21 = vld [vmem:[%s399_s0 + $0xb] sm:$0x1]   ;;  %v218_v22 = vld [vmem:[%s399_s0 + $0xa] sm:$0x1]   ;;  %s280_s15 = smov 40  }
   0xc   :  { %v219_v23 = vld [vmem:[%s399_s0 + $0x9] sm:$0x1]   ;;  %v220_v24 = vld [vmem:[%s399_s0 + $0x8] sm:$0x1]   ;;  %s282_s21 = smov 32   ;;  %s284_s27 = smov 24  }
   0xd   :  { %v221_v25 = vld [vmem:[%s399_s0 + $0x7] sm:$0x1]   ;;  %v222_v26 = vld [vmem:[%s399_s0 + $0x6] sm:$0x1]   ;;  %v223_v27 = vld [vmem:[%s399_s0 + $0x5] sm:$0x1]  }
   0xe   :  { %43 = vrot.lane.b32.xlu0 %v203_v6, %s265_s28  ;;  %49 = vrot.lane.b32.xlu1 %v204_v7, %s266_s29  ;;  %v224_v28 = vld [vmem:[%s399_s0 + $0x4] sm:$0x1]   ;;  %s286_s4 = smov 16   ;;  %v225_v29 = vld [vmem:[%s399_s0 + $0x3] sm:$0x1]   ;;  %s288_s10 = smov 8  }
   0xf   :  { %v226_v30 = vld [vmem:[%s399_s0 + $0x2] sm:$0x1]   ;;  %v227_v31 = vld [vmem:[%s399_s0 + $0x1] sm:$0x1]   ;;  %s289_s0 = smov 4   ;;  %vm27_vm4 = vcmask 950144  }
  0x10   :  { %vm33_vm5 = vcmask 917344   ;;  %vm39_vm6 = vcmask 884544   ;;  %vm45_vm7 = vcmask 851744   ;;  %vm51_vm8 = vcmask 818944  }
  0x11   :  { %vm57_vm9 = vcmask 786144   ;;  %vm63_vm10 = vcmask 753344   ;;  %vm69_vm11 = vcmask 720544   ;;  %vm75_vm12 = vcmask 687744  }
  0x12   :  { %55 = vrot.lane.b32.xlu0 %v205_v8, %s267_s7  ;;  %61 = vrot.lane.b32.xlu1 %v206_v9, %s268_s8  ;;  %s277_s8 = smov 52   ;;  %vm81_vm13 = vcmask 654944   ;;  %vm87_vm14 = vcmask 622144   ;;  %vm93_vm15 = vcmask 589344   ;;  %vm99_vm0 = vcmask 556544  }
  0x16   :  { %67 = vrot.lane.b32.xlu0 %v207_v11, %s269_s13  ;;  %73 = vrot.lane.b32.xlu1 %v208_v12, %s270_s14  ;;  %s279_s14 = smov 44  }
  0x1a   :  { %79 = vrot.lane.b32.xlu0 %v209_v13, %s271_s19  ;;  %85 = vrot.lane.b32.xlu1 %v210_v14, %s272_s20  ;;  %s281_s20 = smov 36  }
  0x1e   :  { %91 = vrot.lane.b32.xlu0 %v211_v15, %s273_s25  ;;  %97 = vrot.lane.b32.xlu1 %v212_v16, %s274_s26  ;;  %s283_s26 = smov 28  }
  0x22   :  { %103 = vrot.lane.b32.xlu0 %v213_v17, %s275_s2  ;;  %109 = vrot.lane.b32.xlu1 %v214_v18, %s276_s3  ;;  %s285_s3 = smov 20  }
  0x26   :  { %115 = vrot.lane.b32.xlu0 %v215_v19, %s277_s8  ;;  %121 = vrot.lane.b32.xlu1 %v216_v20, %s278_s9  ;;  %s287_s9 = smov 12  }
  0x2a   :  { %127 = vrot.lane.b32.xlu0 %v217_v21, %s279_s14  ;;  %133 = vrot.lane.b32.xlu1 %v218_v22, %s280_s15 }
  0x2e   :  { %139 = vrot.lane.b32.xlu0 %v219_v23, %s281_s20  ;;  %145 = vrot.lane.b32.xlu1 %v220_v24, %s282_s21 }
  0x32   :  { %151 = vrot.lane.b32.xlu0 %v221_v25, %s283_s26  ;;  %157 = vrot.lane.b32.xlu1 %v222_v26, %s284_s27 }
  0x36   :  { %163 = vrot.lane.b32.xlu0 %v223_v27, %s285_s3  ;;  %169 = vrot.lane.b32.xlu1 %v224_v28, %s286_s4 }
  0x3a   :  { %175 = vrot.lane.b32.xlu0 %v225_v29, %s287_s9  ;;  %181 = vrot.lane.b32.xlu1 %v226_v30, %s288_s10 }
  0x3e   :  { %187 = vrot.lane.b32.xlu0 %v227_v31, %s289_s0 }
  0x74   :  { %v8_v32 = vpop.permute.xlu0 %7   ;;  %v20_v33 = vpop.permute.xlu1 %19  }
  0x75   :  { %10 = vst.msk [vmem:[#allocation0] sm:$0x1] %vm9_vm1, %v8_v32   ;;  %vm105_vm1 = vcmask 523744  }
  0x78   :  { %v14_v34 = vpop.permute.xlu0 %13   ;;  %v26_v35 = vpop.permute.xlu1 %25  }
  0x79   :  { %16 = vst.msk [vmem:[#allocation0] sm:$0x1] %vm15_vm2, %v14_v34   ;;  %vm111_vm2 = vcmask 490944  }
  0x7a   :  { %22 = vst.msk [vmem:[#allocation0] sm:$0x1] %vm21_vm3, %v20_v33   ;;  %vm117_vm3 = vcmask 458144  }
  0x7b   :  { %28 = vst.msk [vmem:[#allocation0] sm:$0x1] %vm27_vm4, %v26_v35   ;;  %vm123_vm4 = vcmask 425344  }
  0x7c   :  { %v32_v36 = vpop.permute.xlu0 %31   ;;  %v38_v37 = vpop.permute.xlu1 %37  }
  0x7d   :  { %34 = vst.msk [vmem:[#allocation0] sm:$0x1] %vm33_vm5, %v32_v36   ;;  %vm129_vm5 = vcmask 392544  }
  0x7e   :  { %40 = vst.msk [vmem:[#allocation0] sm:$0x1] %vm39_vm6, %v38_v37   ;;  %vm135_vm6 = vcmask 359744  }
  0x80   :  { %v44_v38 = vpop.permute.xlu0 %43   ;;  %v50_v39 = vpop.permute.xlu1 %49  }
  0x81   :  { %46 = vst.msk [vmem:[#allocation0] sm:$0x1] %vm45_vm7, %v44_v38   ;;  %vm141_vm7 = vcmask 326944  }
  0x82   :  { %52 = vst.msk [vmem:[#allocation0] sm:$0x1] %vm51_vm8, %v50_v39   ;;  %vm147_vm8 = vcmask 294144  }
  0x84   :  { %v56_v40 = vpop.permute.xlu0 %55   ;;  %v62_v41 = vpop.permute.xlu1 %61  }
  0x85   :  { %58 = vst.msk [vmem:[#allocation0] sm:$0x1] %vm57_vm9, %v56_v40   ;;  %vm153_vm9 = vcmask 261344  }
  0x86   :  { %64 = vst.msk [vmem:[#allocation0] sm:$0x1] %vm63_vm10, %v62_v41   ;;  %vm159_vm10 = vcmask 228544  }
  0x88   :  { %v68_v42 = vpop.permute.xlu0 %67   ;;  %v74_v43 = vpop.permute.xlu1 %73  }
  0x89   :  { %70 = vst.msk [vmem:[#allocation0] sm:$0x1] %vm69_vm11, %v68_v42   ;;  %vm165_vm11 = vcmask 195744  }
  0x8a   :  { %76 = vst.msk [vmem:[#allocation0] sm:$0x1] %vm75_vm12, %v74_v43   ;;  %vm171_vm12 = vcmask 162944  }
  0x8c   :  { %v80_v44 = vpop.permute.xlu0 %79   ;;  %v86_v45 = vpop.permute.xlu1 %85  }
  0x8d   :  { %82 = vst.msk [vmem:[#allocation0] sm:$0x1] %vm81_vm13, %v80_v44   ;;  %vm177_vm13 = vcmask 130144  }
  0x8e   :  { %88 = vst.msk [vmem:[#allocation0] sm:$0x1] %vm87_vm14, %v86_v45   ;;  %vm183_vm14 = vcmask 97344  }
  0x90   :  { %v92_v46 = vpop.permute.xlu0 %91   ;;  %v98_v47 = vpop.permute.xlu1 %97  }
  0x91   :  { %94 = vst.msk [vmem:[#allocation0] sm:$0x1] %vm93_vm15, %v92_v46   ;;  %vm189_vm15 = vcmask 64544  }
  0x92   :  { %100 = vst.msk [vmem:[#allocation0] sm:$0x1] %vm99_vm0, %v98_v47  }
  0x94   :  { %v104_v48 = vpop.permute.xlu0 %103   ;;  %v110_v49 = vpop.permute.xlu1 %109  }
  0x95   :  { %106 = vst.msk [vmem:[#allocation0] sm:$0x1] %vm105_vm1, %v104_v48  }
  0x96   :  { %112 = vst.msk [vmem:[#allocation0] sm:$0x1] %vm111_vm2, %v110_v49  }
  0x98   :  { %v116_v50 = vpop.permute.xlu0 %115   ;;  %v122_v51 = vpop.permute.xlu1 %121  }
  0x99   :  { %118 = vst.msk [vmem:[#allocation0] sm:$0x1] %vm117_vm3, %v116_v50  }
  0x9a   :  { %124 = vst.msk [vmem:[#allocation0] sm:$0x1] %vm123_vm4, %v122_v51  }
  0x9c   :  { %v128_v52 = vpop.permute.xlu0 %127   ;;  %v134_v53 = vpop.permute.xlu1 %133  }
  0x9d   :  { %130 = vst.msk [vmem:[#allocation0] sm:$0x1] %vm129_vm5, %v128_v52  }
  0x9e   :  { %136 = vst.msk [vmem:[#allocation0] sm:$0x1] %vm135_vm6, %v134_v53  }
  0xa0   :  { %v140_v54 = vpop.permute.xlu0 %139   ;;  %v146_v55 = vpop.permute.xlu1 %145  }
  0xa1   :  { %142 = vst.msk [vmem:[#allocation0] sm:$0x1] %vm141_vm7, %v140_v54  }
  0xa2   :  { %148 = vst.msk [vmem:[#allocation0] sm:$0x1] %vm147_vm8, %v146_v55  }
  0xa4   :  { %v152_v56 = vpop.permute.xlu0 %151   ;;  %v158_v57 = vpop.permute.xlu1 %157  }
  0xa5   :  { %154 = vst.msk [vmem:[#allocation0] sm:$0x1] %vm153_vm9, %v152_v56  }
  0xa6   :  { %160 = vst.msk [vmem:[#allocation0] sm:$0x1] %vm159_vm10, %v158_v57  }
  0xa8   :  { %v164_v58 = vpop.permute.xlu0 %163   ;;  %v170_v59 = vpop.permute.xlu1 %169  }
  0xa9   :  { %166 = vst.msk [vmem:[#allocation0] sm:$0x1] %vm165_vm11, %v164_v58  }
  0xaa   :  { %172 = vst.msk [vmem:[#allocation0] sm:$0x1] %vm171_vm12, %v170_v59  }
  0xac   :  { %v176_v60 = vpop.permute.xlu0 %175   ;;  %v182_v61 = vpop.permute.xlu1 %181  }
  0xad   :  { %178 = vst.msk [vmem:[#allocation0] sm:$0x1] %vm177_vm13, %v176_v60  }
  0xae   :  { %184 = vst.msk [vmem:[#allocation0] sm:$0x1] %vm183_vm14, %v182_v61  }
  0xb0   :  { %v188_v62 = vpop.permute.xlu0 %187  }
  0xb1   :  { %190 = vst.msk [vmem:[#allocation0] sm:$0x1] %vm189_vm15, %v188_v62  }
  0xb8   :  { %v194_v63 = vld [vmem:[#allocation0] sm:$0x1] }
  0xb9   :  { %196 = vst [vmem:[%s400_s1] sm:$0x1] %v194_v63 }

// kernel: conv_module_forward.1
= control target key start
LH: loop header
LB: loop body
LE: loop exit
PB: predicated region body
PF: predicated region fallthrough
CT: control target
= control target key end

     0   :  { %v29_v9 = vlaneseq  ;;  %vm1431_vm2 = vmmov 1   ;;  %v1432_v29 = vmov 0.0   ;;  %vm1433_vm4 = vmmov 0   ;;  %s1876_s1 = inlined_call_operand.vmem [shape: bf16[384,128], index: 1, kind: input, shape index: {}]   ;;  %s1877_s0 = inlined_call_operand.vmem [shape: f32[16,128], index: 0, kind: input, shape index: {}]   ;;  %s1878_s3 = inlined_call_operand.vmem [shape: bf16[384,128], index: 3, kind: input, shape index: {}]   ;;  %s1879_s5 = inlined_call_operand.vmem [shape: bf16[384,256], index: 5, kind: input, shape index: {}]   ;;  %s1880_s2 = inlined_call_operand.vmem [shape: f32[1,128], index: 2, kind: input, shape index: {}]   ;;  %s1881_s4 = inlined_call_operand.vmem [shape: f32[1,128], index: 4, kind: input, shape index: {}]   ;;  %s1882_s6 = inlined_call_operand.vmem [shape: f32[1,256], index: 6, kind: input, shape index: {}]   ;;  %s1883_s7 = inlined_call_operand.vmem [shape: f32[16,256], index: 7, kind: output, shape index: {}]  }
   0x1   :  { %v1311_v0 = vld [vmem:[%s1876_s1 + $0x40] sm:$0xff]   ;;  %v1313_v2 = vld [vmem:[%s1876_s1 + $0x48] sm:$0xff]   ;;  %v1315_v4 = vld [vmem:[%s1876_s1 + $0x50] sm:$0xff]  }
   0x2   :  { %v1312_v1 = vld [vmem:[%s1876_s1] sm:$0xff]   ;;  %1197 = vmatprep.subr.bf16.mxu1 %v1311_v0  ;;  %v1314_v3 = vld [vmem:[%s1876_s1 + $0x8] sm:$0xff]   ;;  %v1316_v5 = vld [vmem:[%s1876_s1 + $0x10] sm:$0xff]   ;;  %v1518_v14 = vshrl.u32 %v29_v9, 7 }
   0x3   :  { %1198 = vmatpush3.bf16.msra.mxu1 %v1312_v1  ;;  %v1317_v6 = vld [vmem:[%s1876_s1 + $0x58] sm:$0xff]   ;;  %v1319_v8 = vld [vmem:[%s1876_s1 + $0x60] sm:$0xff]   ;;  %v1321_v11 = vld [vmem:[%s1876_s1 + $0x68] sm:$0xff]  }
   0x4   :  { %1199 = vmatprep.subr.bf16.mxu1 %v1313_v2  ;;  %v1318_v7 = vld [vmem:[%s1876_s1 + $0x18] sm:$0xff]   ;;  %v1320_v10 = vld [vmem:[%s1876_s1 + $0x20] sm:$0xff]   ;;  %v1516_v13 = vld [vmem:[%s1877_s0 + $0x8] sm:$0xff]  ;;  %v36_v19 = vand.u32 15, %v1518_v14  ;;  %vm62_vm0 = vcmp.lt.s32.totalorder %v1518_v14, 1  ;;  %v31_v35 = vadd.s32 8, %v1518_v14 }
   0x5   :  { %v1511_v12 = vld [vmem:[%s1877_s0] sm:$0xff]  ;;  %v1322_v16 = vld [vmem:[%s1876_s1 + $0x28] sm:$0xff]   ;;  %v1323_v17 = vld [vmem:[%s1876_s1 + $0x70] sm:$0xff]   ;;  %v61_v21 = vrot.slane %v1516_v13, 7  ;;  %v69_v37 = vrot.slane %v1516_v13, 1  ;;  %vm70_vm5 = vcmp.lt.s32.totalorder %v1518_v14, 7 }
   0x6   :  { %v76_v15 = vpack.c.bf16 %v1516_v13, %v1511_v12  ;;  %v1324_v18 = vld [vmem:[%s1876_s1 + $0x30] sm:$0xff]   ;;  %v60_v20 = vrot.slane %v1511_v12, 7  ;;  %v1325_v22 = vld [vmem:[%s1876_s1 + $0x78] sm:$0xff]   ;;  %vm1195_vm1 = vcmp.ne.s32.totalorder %v36_v19, 0  ;;  %v1327_v28 = vld [vmem:[%s1876_s1 + $0x80] sm:$0xff]   ;;  %v68_v36 = vrot.slane %v1511_v12, 1 }
   0x7   :  { %1200 = vmatpush3.bf16.msra.mxu1 %v1314_v3  ;;  %v1326_v23 = vld [vmem:[%s1876_s1 + $0x38] sm:$0xff]   ;;  %vm1546_vm3 = vmpackc.low %vm1431_vm2, %vm1195_vm1  ;;  %v1328_v30 = vld [vmem:[%s1876_s1 + $0x88] sm:$0xff]   ;;  %v43_v39 = vand.u32 15, %v31_v35 }
   0x8   :  { %1201 = vmatprep.subr.bf16.mxu1 %v1315_v4  ;;  %308 = vmatprep.mubr.bf16.mxu1 %v76_v15  ;;  %v63_v24 = vsel %vm62_vm0, %v60_v20, %v61_v21  ;;  %v64_v25 = vsel %vm62_vm0, %v61_v21, %v60_v20  ;;  %v1329_v31 = vld [vmem:[%s1876_s1 + $0x90] sm:$0xff]   ;;  %v1330_v32 = vld [vmem:[%s1876_s1 + $0x98] sm:$0xff]   ;;  %v1331_v33 = vld [vmem:[%s1876_s1 + $0xa0] sm:$0xff]   ;;  %v71_v40 = vsel %vm70_vm5, %v68_v36, %v69_v37 }
   0x9   :  { %v1100_v26 = vpack.c.bf16 %v63_v24, %v64_v25  ;;  %v1332_v34 = vld [vmem:[%s1876_s1 + $0xa8] sm:$0xff]   ;;  %v1333_v38 = vld [vmem:[%s1876_s1 + $0xb0] sm:$0xff]   ;;  %v72_v41 = vsel %vm70_vm5, %v69_v37, %v68_v36  ;;  %v1334_v42 = vld [vmem:[%s1876_s1 + $0xb8] sm:$0xff]   ;;  %vm1196_vm6 = vcmp.ne.s32.totalorder %v43_v39, 15 }
   0xa   :  { %v1104_v43 = vpack.c.bf16 %v72_v41, %v71_v40  ;;  %vm1595_vm7 = vmpackc.low %vm1196_vm6, %vm1431_vm2  ;;  %v1335_v45 = vld [vmem:[%s1878_s3 + $0x40] sm:$0xff]   ;;  %v1338_v48 = vld [vmem:[%s1878_s3 + $0x48] sm:$0xff]  }
   0xb   :  { %1202 = vmatpush3.bf16.msra.mxu1 %v1316_v5  ;;  %v1336_v46 = vld [vmem:[%s1878_s3] sm:$0xff]   ;;  %1228 = vmatprep.subr.bf16.mxu0 %v1335_v45  ;;  %v1339_v49 = vld [vmem:[%s1878_s3 + $0x8] sm:$0xff]   ;;  %v1341_v51 = vld [vmem:[%s1878_s3 + $0x50] sm:$0xff]  }
   0xc   :  { %1203 = vmatprep.subr.bf16.mxu1 %v1317_v6  ;;  %v1337_v47 = vld [vmem:[%s1878_s3 + $0x80] sm:$0xff]   ;;  %1229 = vmatpush3.bf16.msra.mxu0 %v1336_v46  ;;  %v1340_v50 = vld [vmem:[%s1878_s3 + $0x88] sm:$0xff]   ;;  %v1342_v52 = vld [vmem:[%s1878_s3 + $0x10] sm:$0xff]  }
   0xd   :  { %1230 = vmatprep.subr.bf16.mxu0 %v1338_v48  ;;  %v1343_v53 = vld [vmem:[%s1878_s3 + $0x90] sm:$0xff]   ;;  %v1344_v54 = vld [vmem:[%s1878_s3 + $0x58] sm:$0xff]   ;;  %v1347_v57 = vld [vmem:[%s1878_s3 + $0x60] sm:$0xff]  }
   0xe   :  { %v1345_v55 = vld [vmem:[%s1878_s3 + $0x18] sm:$0xff]   ;;  %v1348_v58 = vld [vmem:[%s1878_s3 + $0x20] sm:$0xff]   ;;  %v1350_v60 = vld [vmem:[%s1878_s3 + $0x68] sm:$0xff]  }
   0xf   :  { %1204 = vmatpush3.bf16.msra.mxu1 %v1318_v7  ;;  %v1346_v56 = vld [vmem:[%s1878_s3 + $0x98] sm:$0xff]   ;;  %v1349_v59 = vld [vmem:[%s1878_s3 + $0xa0] sm:$0xff]   ;;  %v1351_v61 = vld [vmem:[%s1878_s3 + $0x28] sm:$0xff]  }
  0x10   :  { %1205 = vmatprep.subr.bf16.mxu1 %v1319_v8  ;;  %1231 = vmatpush3.bf16.msra.mxu0 %v1339_v49  ;;  %v1352_v62 = vld [vmem:[%s1878_s3 + $0xa8] sm:$0xff]   ;;  %v1353_v63 = vld [vmem:[%s1878_s3 + $0x70] sm:$0xff]   ;;  %v1356_v2 = vld [vmem:[%s1878_s3 + $0x78] sm:$0xff]  }
  0x11   :  { %1232 = vmatprep.subr.bf16.mxu0 %v1341_v51  ;;  %v1354_v0 = vld [vmem:[%s1878_s3 + $0x30] sm:$0xff]   ;;  %v1357_v3 = vld [vmem:[%s1878_s3 + $0x38] sm:$0xff]   ;;  %v1361_v5 = vld [vmem:[%s1879_s5 + $0x4] ss:$8 sps:$4 sm:$0xff]  }
  0x12   :  { %v1355_v1 = vld [vmem:[%s1878_s3 + $0xb0] sm:$0xff]   ;;  %v1358_v4 = vld [vmem:[%s1878_s3 + $0xb8] sm:$0xff]   ;;  %v1073_v15 = vld [vmem:[%s1880_s2] ss:$0 sm:$0xff] }
  0x13   :  { %1206 = vmatpush3.bf16.msra.mxu1 %v1320_v10  ;;  %v1359_v36 = vld [vmem:[%s1879_s5] ss:$8 sps:$4 sm:$0xff]   ;;  %v1364_v39 = vld [vmem:[%s1879_s5 + $0x14] ss:$8 sps:$4 sm:$0xff]   ;;  %v1362_v40 = vld [vmem:[%s1879_s5 + $0x10] ss:$8 sps:$4 sm:$0xff]  }
  0x14   :  { %1207 = vmatprep.subr.bf16.mxu1 %v1321_v11  ;;  %1233 = vmatpush3.bf16.msra.mxu0 %v1342_v52  ;;  %v1367_v41 = vld [vmem:[%s1879_s5 + $0x24] ss:$8 sps:$4 sm:$0xff]   ;;  %v1368_v45 = vld [vmem:[%s1879_s5 + $0x30] ss:$8 sps:$4 sm:$0xff]   ;;  %v1376_v48 = vld [vmem:[%s1879_s5 + $0x54] ss:$8 sps:$4 sm:$0xff]  }
  0x15   :  { %1234 = vmatprep.subr.bf16.mxu0 %v1344_v54  ;;  %v1373_v46 = vld [vmem:[%s1879_s5 + $0x44] ss:$8 sps:$4 sm:$0xff]   ;;  %v1374_v49 = vld [vmem:[%s1879_s5 + $0x50] ss:$8 sps:$4 sm:$0xff]   ;;  %v1377_v51 = vld [vmem:[%s1879_s5 + $0x60] ss:$8 sps:$4 sm:$0xff]  }
  0x16   :  { %v1382_v52 = vld [vmem:[%s1879_s5 + $0x74] ss:$8 sps:$4 sm:$0xff]   ;;  %v1385_v54 = vld [vmem:[%s1879_s5 + $0x84] ss:$8 sps:$4 sm:$0xff]  }
  0x17   :  { %1208 = vmatpush3.bf16.msra.mxu1 %v1322_v16  ;;  %v1418_v27 = vld [vmem:[%s1879_s5 + $0x134] ss:$8 sps:$4 sm:$0xff]  }
  0x18   :  { %1209 = vmatprep.subr.bf16.mxu1 %v1323_v17  ;;  %1235 = vmatpush3.bf16.msra.mxu0 %v1345_v55  ;;  %v1383_v55 = vld [vmem:[%s1879_s5 + $0x80] ss:$8 sps:$4 sm:$0xff]  }
  0x19   :  { %1236 = vmatprep.subr.bf16.mxu0 %v1347_v57  ;;  %v1386_v57 = vld [vmem:[%s1879_s5 + $0x90] ss:$8 sps:$4 sm:$0xff]  }
  0x1b   :  { %1210 = vmatpush3.bf16.msra.mxu1 %v1324_v18 }
  0x1c   :  { %1211 = vmatprep.subr.bf16.mxu1 %v1325_v22  ;;  %1237 = vmatpush3.bf16.msra.mxu0 %v1348_v58  ;;  %v1391_v58 = vld [vmem:[%s1879_s5 + $0xa4] ss:$8 sps:$4 sm:$0xff]  }
  0x1d   :  { %1238 = vmatprep.subr.bf16.mxu0 %v1350_v60  ;;  %v1394_v60 = vld [vmem:[%s1879_s5 + $0xb4] ss:$8 sps:$4 sm:$0xff]  }
  0x1f   :  { %1212 = vmatpush3.bf16.msra.mxu1 %v1326_v23 }
  0x20   :  { %1259 = vmatprep.subr.bf16.mxu1 %v1432_v29  ;;  %1239 = vmatpush3.bf16.msra.mxu0 %v1351_v61  ;;  %v1392_v61 = vld [vmem:[%s1879_s5 + $0xb0] ss:$8 sps:$4 sm:$0xff]  }
  0x21   :  { %1240 = vmatprep.subr.bf16.mxu0 %v1353_v63  ;;  %v1395_v63 = vld [vmem:[%s1879_s5 + $0xc0] ss:$8 sps:$4 sm:$0xff]  }
  0x22   :  { %1101 = vmatmul.mubr.msk.bf16.vlgmr.msra.gmra.mrb[0].mxu1 %vm1546_vm3, %v1100_v26 }
  0x23   :  { %1260 = vmatpush3.bf16.msra.mxu1 %v1327_v28  ;;  %1275 = vmatprep.mubr.msk.bf16.mxu1 %vm1433_vm4, %v1432_v29 }
  0x24   :  { %1261 = vmatprep.subr.bf16.mxu1 %v1432_v29  ;;  %1241 = vmatpush3.bf16.msra.mxu0 %v1354_v0  ;;  %v1400_v0 = vld [vmem:[%s1879_s5 + $0xd4] ss:$8 sps:$4 sm:$0xff]  }
  0x25   :  { %1242 = vmatprep.subr.bf16.mxu0 %v1356_v2  ;;  %v1403_v2 = vld [vmem:[%s1879_s5 + $0xe4] ss:$8 sps:$4 sm:$0xff]  }
  0x27   :  { %1262 = vmatpush3.bf16.msra.mxu1 %v1328_v30 }
  0x28   :  { %1263 = vmatprep.subr.bf16.mxu1 %v1432_v29  ;;  %1243 = vmatpush3.bf16.msra.mxu0 %v1357_v3  ;;  %v1401_v3 = vld [vmem:[%s1879_s5 + $0xe0] ss:$8 sps:$4 sm:$0xff]  }
  0x29   :  { %975 = vmatprep.subr.bf16.mxu0 %v1361_v5  ;;  %v1404_v5 = vld [vmem:[%s1879_s5 + $0xf0] ss:$8 sps:$4 sm:$0xff]  }
  0x2b   :  { %1264 = vmatpush3.bf16.msra.mxu1 %v1329_v31 }
  0x2c   :  { %1265 = vmatprep.subr.bf16.mxu1 %v1432_v29 }
  0x2f   :  { %1266 = vmatpush3.bf16.msra.mxu1 %v1330_v32 }
  0x30   :  { %1267 = vmatprep.subr.bf16.mxu1 %v1432_v29 }
  0x33   :  { %1268 = vmatpush3.bf16.msra.mxu1 %v1331_v33 }
  0x34   :  { %1269 = vmatprep.subr.bf16.mxu1 %v1432_v29 }
  0x37   :  { %1270 = vmatpush3.bf16.msra.mxu1 %v1332_v34 }
  0x38   :  { %1271 = vmatprep.subr.bf16.mxu1 %v1432_v29 }
  0x3b   :  { %1272 = vmatpush3.bf16.msra.mxu1 %v1333_v38 }
  0x3c   :  { %1273 = vmatprep.subr.bf16.mxu1 %v1432_v29 }
  0x3f   :  { %1274 = vmatpush3.bf16.msra.mxu1 %v1334_v42  ;;  %v1365_v42 = vld [vmem:[%s1879_s5 + $0x20] ss:$8 sps:$4 sm:$0xff]  }
  0x40   :  { %1279 = vmatprep.subr.bf16.mxu1 %v1432_v29 }
  0x42   :  { %1276 = vmatmul.mubr.msk.bf16.vlgmr.msra.gmra.mrb[4].mxu1 %vm1595_vm7, %v1104_v43  ;;  %v1370_v43 = vld [vmem:[%s1879_s5 + $0x34] ss:$8 sps:$4 sm:$0xff]  }
  0x43   :  { %1295 = vmatprep.mubr.msk.bf16.mxu1 %vm1433_vm4, %v1432_v29  ;;  %1280 = vmatpush3.bf16.msra.mxu1 %v1337_v47  ;;  %v1371_v47 = vld [vmem:[%s1879_s5 + $0x40] ss:$8 sps:$4 sm:$0xff]  }
  0x44   :  { %1281 = vmatprep.subr.bf16.mxu1 %v1432_v29 }
  0x47   :  { %1282 = vmatpush3.bf16.msra.mxu1 %v1340_v50  ;;  %v1379_v50 = vld [vmem:[%s1879_s5 + $0x64] ss:$8 sps:$4 sm:$0xff]  }
  0x48   :  { %1283 = vmatprep.subr.bf16.mxu1 %v1432_v29 }
  0x4b   :  { %1284 = vmatpush3.bf16.msra.mxu1 %v1343_v53  ;;  %v1380_v53 = vld [vmem:[%s1879_s5 + $0x70] ss:$8 sps:$4 sm:$0xff]  }
  0x4c   :  { %1285 = vmatprep.subr.bf16.mxu1 %v1432_v29 }
  0x4f   :  { %1286 = vmatpush3.bf16.msra.mxu1 %v1346_v56  ;;  %v1388_v56 = vld [vmem:[%s1879_s5 + $0x94] ss:$8 sps:$4 sm:$0xff]  }
  0x50   :  { %1287 = vmatprep.subr.bf16.mxu1 %v1432_v29 }
  0x53   :  { %1288 = vmatpush3.bf16.msra.mxu1 %v1349_v59  ;;  %v1389_v59 = vld [vmem:[%s1879_s5 + $0xa0] ss:$8 sps:$4 sm:$0xff]  }
  0x54   :  { %1289 = vmatprep.subr.bf16.mxu1 %v1432_v29 }
  0x57   :  { %1290 = vmatpush3.bf16.msra.mxu1 %v1352_v62  ;;  %v1397_v62 = vld [vmem:[%s1879_s5 + $0xc4] ss:$8 sps:$4 sm:$0xff]  }
  0x58   :  { %1291 = vmatprep.subr.bf16.mxu1 %v1432_v29 }
  0x5b   :  { %1292 = vmatpush3.bf16.msra.mxu1 %v1355_v1  ;;  %v1398_v1 = vld [vmem:[%s1879_s5 + $0xd0] ss:$8 sps:$4 sm:$0xff]  }
  0x5c   :  { %1293 = vmatprep.subr.bf16.mxu1 %v1432_v29 }
  0x5f   :  { %1294 = vmatpush3.bf16.msra.mxu1 %v1358_v4  ;;  %v1406_v4 = vld [vmem:[%s1879_s5 + $0xf4] ss:$8 sps:$4 sm:$0xff]  }
  0xf5   :  { %v1213_v6 = vpop.f32.mrb[0].mxu1 }
  0xf6   :  { %v1214_v7 = vpop.f32.mrb[1].mxu1 }
  0xf7   :  { %v1215_v8 = vadd.f32 %v1214_v7, %v1213_v6  ;;  %v1216_v9 = vpop.f32.mrb[2].mxu1  ;;  %v1409_v6 = vld [vmem:[%s1879_s5 + $0x104] ss:$8 sps:$4 sm:$0xff]  }
  0xf8   :  { %v1217_v10 = vpop.f32.mrb[3].mxu1 }
  0xf9   :  { %v1218_v11 = vadd.f32 %v1217_v10, %v1216_v9  ;;  %v311_v16 = vadd.f32 %v1215_v8, %v1073_v15  ;;  %v1106_v9 = vld [vmem:[%s1881_s4] ss:$0 sm:$0xff] }
  0xfb   :  { %v314_v20 = vadd.f32 %v1218_v11, %v1073_v15 }
 0x115   :  { %v351_v17 = vpop.f32.mrb[4].mxu1 }
 0x116   :  { %v352_v18 = vadd.f32 %v351_v17, %v311_v16  ;;  %v1277_v19 = vpop.f32.mrb[5].mxu1 }
 0x117   :  { %v354_v21 = vpop.f32.mrb[6].mxu1 }
 0x118   :  { %v358_v22 = vmax.f32 %v352_v18, 0.0  ;;  %v355_v23 = vadd.f32 %v354_v21, %v314_v20  ;;  %v1278_v24 = vpop.f32.mrb[7].mxu1 }
 0x11a   :  { %v359_v25 = vmax.f32 %v355_v23, 0.0  ;;  %v360_v26 = vrot.slane %v358_v22, 7  ;;  %v367_v28 = vrot.slane %v358_v22, 1 }
 0x11c   :  { %v361_v29 = vrot.slane %v359_v25, 7  ;;  %v368_v30 = vrot.slane %v359_v25, 1  ;;  %v374_v31 = vpack.c.bf16 %v359_v25, %v358_v22 }
 0x11e   :  { %v369_v32 = vsel %vm70_vm5, %v367_v28, %v368_v30  ;;  %v370_v33 = vsel %vm70_vm5, %v368_v30, %v367_v28  ;;  %606 = vmatprep.mubr.bf16.mxu0 %v374_v31  ;;  %v362_v34 = vsel %vm62_vm0, %v360_v26, %v361_v29  ;;  %v363_v35 = vsel %vm62_vm0, %v361_v29, %v360_v26 }
 0x11f   :  { %v1137_v37 = vpack.c.bf16 %v370_v33, %v369_v32  ;;  %v1133_v38 = vpack.c.bf16 %v362_v34, %v363_v35  ;;  %v1407_v35 = vld [vmem:[%s1879_s5 + $0x100] ss:$8 sps:$4 sm:$0xff]  }
 0x121   :  { %1134 = vmatmul.mubr.msk.bf16.vlgmr.msra.gmra.mrb[0].mxu0 %vm1546_vm3, %v1133_v38  ;;  %1296 = vmatmul.mubr.msk.bf16.vlgmr.msra.gmra.mrb[8].mxu1 %vm1595_vm7, %v1137_v37 }
 0x122   :  { %976 = vmatpush1.bf16.msra.mxu0 %v1359_v36 }
 0x123   :  { %977 = vmatprep.subr.bf16.mxu0 %v1364_v39  ;;  %v1412_v39 = vld [vmem:[%s1879_s5 + $0x114] ss:$8 sps:$4 sm:$0xff]  }
 0x126   :  { %978 = vmatpush1.bf16.msra.mxu0 %v1362_v40 }
 0x127   :  { %979 = vmatprep.subr.bf16.mxu0 %v1367_v41  ;;  %v1410_v41 = vld [vmem:[%s1879_s5 + $0x110] ss:$8 sps:$4 sm:$0xff]  }
 0x12a   :  { %980 = vmatpush1.bf16.msra.mxu0 %v1365_v42  ;;  %v1434_v42 = vmov 0  }
 0x12b   :  { %981 = vmatprep.subr.bf16.mxu0 %v1370_v43  ;;  %v1415_v43 = vld [vmem:[%s1879_s5 + $0x124] ss:$8 sps:$4 sm:$0xff]  }
 0x12e   :  { %982 = vmatpush1.bf16.msra.mxu0 %v1368_v45  ;;  %v1413_v45 = vld [vmem:[%s1879_s5 + $0x120] ss:$8 sps:$4 sm:$0xff]  }
 0x12f   :  { %983 = vmatprep.subr.bf16.mxu0 %v1373_v46  ;;  %v1416_v46 = vld [vmem:[%s1879_s5 + $0x130] ss:$8 sps:$4 sm:$0xff]  }
 0x132   :  { %984 = vmatpush1.bf16.msra.mxu0 %v1371_v47  ;;  %v1421_v47 = vld [vmem:[%s1879_s5 + $0x144] ss:$8 sps:$4 sm:$0xff]  }
 0x133   :  { %985 = vmatprep.subr.bf16.mxu0 %v1376_v48  ;;  %v1419_v48 = vld [vmem:[%s1879_s5 + $0x140] ss:$8 sps:$4 sm:$0xff]  }
 0x136   :  { %986 = vmatpush1.bf16.msra.mxu0 %v1374_v49  ;;  %v1424_v49 = vld [vmem:[%s1879_s5 + $0x154] ss:$8 sps:$4 sm:$0xff]  }
 0x137   :  { %987 = vmatprep.subr.bf16.mxu0 %v1379_v50  ;;  %v1422_v50 = vld [vmem:[%s1879_s5 + $0x150] ss:$8 sps:$4 sm:$0xff]  }
 0x13a   :  { %988 = vmatpush1.bf16.msra.mxu0 %v1377_v51  ;;  %v1427_v51 = vld [vmem:[%s1879_s5 + $0x164] ss:$8 sps:$4 sm:$0xff]  }
 0x13b   :  { %989 = vmatprep.subr.bf16.mxu0 %v1382_v52  ;;  %v1425_v52 = vld [vmem:[%s1879_s5 + $0x160] ss:$8 sps:$4 sm:$0xff]  }
 0x13e   :  { %990 = vmatpush1.bf16.msra.mxu0 %v1380_v53  ;;  %v1430_v53 = vld [vmem:[%s1879_s5 + $0x174] ss:$8 sps:$4 sm:$0xff]  }
 0x13f   :  { %991 = vmatprep.subr.bf16.mxu0 %v1385_v54  ;;  %v1428_v54 = vld [vmem:[%s1879_s5 + $0x170] ss:$8 sps:$4 sm:$0xff]  }
 0x142   :  { %992 = vmatpush1.bf16.msra.mxu0 %v1383_v55  ;;  %v727_v55 = vsub.s32 0, %v1518_v14 }
 0x143   :  { %993 = vmatprep.subr.bf16.mxu0 %v1388_v56  ;;  %v723_v56 = vld [vmem:[%s1882_s6] sm:$0x3] }
 0x146   :  { %994 = vmatpush1.bf16.msra.mxu0 %v1386_v57  ;;  %v731_v57 = vsub.s32 1, %v1518_v14 }
 0x147   :  { %995 = vmatprep.subr.bf16.mxu0 %v1391_v58  ;;  %v728_v58 = vrot.slane %v723_v56, %v727_v55 }
 0x14a   :  { %996 = vmatpush1.bf16.msra.mxu0 %v1389_v59  ;;  %v732_v59 = vrot.slane %v723_v56, %v731_v57 }
 0x14b   :  { %997 = vmatprep.subr.bf16.mxu0 %v1394_v60 }
 0x14e   :  { %998 = vmatpush1.bf16.msra.mxu0 %v1392_v61 }
 0x14f   :  { %999 = vmatprep.subr.bf16.mxu0 %v1397_v62 }
 0x152   :  { %1000 = vmatpush1.bf16.msra.mxu0 %v1395_v63 }
 0x153   :  { %1001 = vmatprep.subr.bf16.mxu0 %v1400_v0 }
 0x156   :  { %1002 = vmatpush1.bf16.msra.mxu0 %v1398_v1 }
 0x157   :  { %1003 = vmatprep.subr.bf16.mxu0 %v1403_v2 }
 0x15a   :  { %1004 = vmatpush1.bf16.msra.mxu0 %v1401_v3 }
 0x15b   :  { %1005 = vmatprep.subr.bf16.mxu0 %v1406_v4 }
 0x15e   :  { %1006 = vmatpush1.bf16.msra.mxu0 %v1404_v5 }
 0x15f   :  { %1018 = vmatprep.subr.bf16.mxu0 %v1409_v6 }
 0x1f4   :  { %v1244_v7 = vpop.f32.mrb[0].mxu0  ;;  %v649_v8 = vpop.f32.mrb[8].mxu1 }
 0x1f5   :  { %v1245_v10 = vpop.f32.mrb[1].mxu0  ;;  %v1297_v11 = vpop.f32.mrb[9].mxu1 }
 0x1f6   :  { %v1246_v15 = vadd.f32 %v1245_v10, %v1244_v7  ;;  %v1247_v16 = vpop.f32.mrb[2].mxu0  ;;  %v652_v17 = vpop.f32.mrb[10].mxu1 }
 0x1f7   :  { %v1248_v18 = vpop.f32.mrb[3].mxu0  ;;  %v1298_v19 = vpop.f32.mrb[11].mxu1 }
 0x1f8   :  { %v609_v20 = vadd.f32 %v1246_v15, %v1106_v9  ;;  %v1249_v21 = vadd.f32 %v1248_v18, %v1247_v16 }
 0x1fa   :  { %v650_v22 = vadd.f32 %v649_v8, %v609_v20  ;;  %v612_v23 = vadd.f32 %v1249_v21, %v1106_v9 }
 0x1fc   :  { %v656_v24 = vmax.f32 %v650_v22, 0.0  ;;  %v653_v25 = vadd.f32 %v652_v17, %v612_v23 }
 0x1fe   :  { %v658_v26 = vadd.f32 %v656_v24, %v1511_v12  ;;  %v657_v28 = vmax.f32 %v653_v25, 0.0 }
 0x200   :  { %v659_v29 = vadd.f32 %v657_v28, %v1516_v13  ;;  %v660_v30 = vrot.slane %v658_v26, 7  ;;  %v667_v31 = vrot.slane %v658_v26, 1 }
 0x202   :  { %v661_v32 = vrot.slane %v659_v29, 7  ;;  %v668_v33 = vrot.slane %v659_v29, 1  ;;  %v674_v34 = vpack.c.bf16 %v659_v29, %v658_v26 }
 0x204   :  { %1007 = vmatprep.mubr.bf16.mxu0 %v674_v34  ;;  %v662_v36 = vsel %vm62_vm0, %v660_v30, %v661_v32  ;;  %v663_v37 = vsel %vm62_vm0, %v661_v32, %v660_v30  ;;  %v669_v12 = vsel %vm70_vm5, %v667_v31, %v668_v33  ;;  %v670_v13 = vsel %vm70_vm5, %v668_v33, %v667_v31 }
 0x205   :  { %v1189_v38 = vpack.c.bf16 %v662_v36, %v663_v37  ;;  %v1193_v40 = vpack.c.bf16 %v670_v13, %v669_v12 }
 0x207   :  { %1190 = vmatmul.mubr.msk.bf16.vlgmr.msra.gmra.mrb[4].mxu0 %vm1546_vm3, %v1189_v38 }
 0x208   :  { %1019 = vmatpush1.bf16.msra.mxu0 %v1407_v35  ;;  %1050 = vmatprep.mubr.bf16.mxu0 %v1434_v42 }
 0x209   :  { %1020 = vmatprep.subr.bf16.mxu0 %v1412_v39 }
 0x20c   :  { %1021 = vmatpush1.bf16.msra.mxu0 %v1410_v41 }
 0x20d   :  { %1022 = vmatprep.subr.bf16.mxu0 %v1415_v43 }
 0x210   :  { %1023 = vmatpush1.bf16.msra.mxu0 %v1413_v45 }
 0x211   :  { %1024 = vmatprep.subr.bf16.mxu0 %v1418_v27 }
 0x214   :  { %1025 = vmatpush1.bf16.msra.mxu0 %v1416_v46 }
 0x215   :  { %1026 = vmatprep.subr.bf16.mxu0 %v1421_v47 }
 0x218   :  { %1027 = vmatpush1.bf16.msra.mxu0 %v1419_v48 }
 0x219   :  { %1028 = vmatprep.subr.bf16.mxu0 %v1424_v49 }
 0x21c   :  { %1029 = vmatpush1.bf16.msra.mxu0 %v1422_v50 }
 0x21d   :  { %1030 = vmatprep.subr.bf16.mxu0 %v1427_v51 }
 0x220   :  { %1031 = vmatpush1.bf16.msra.mxu0 %v1425_v52 }
 0x221   :  { %1032 = vmatprep.subr.bf16.mxu0 %v1430_v53 }
 0x224   :  { %1033 = vmatpush1.bf16.msra.mxu0 %v1428_v54 }
 0x227   :  { %1194 = vmatmul.mubr.msk.bf16.vlgmr.msra.gmra.mrb[4].mxu0 %vm1595_vm7, %v1193_v40 }
 0x2fa   :  { %v1052_v60 = vpop.f32.mrb[4].mxu0 }
 0x2fb   :  { %v1299_v61 = vadd.f32 %v1052_v60, %v728_v58  ;;  %v1054_v62 = vpop.f32.mrb[5].mxu0 }
 0x2fc   :  { %v1300_v63 = vadd.f32 %v1054_v62, %v732_v59  ;;  %v1056_v0 = vpop.f32.mrb[6].mxu0 }
 0x2fd   :  { %v1061_v1 = vmax.f32 %v1299_v61, 0.0  ;;  %v1301_v2 = vadd.f32 %v1056_v0, %v728_v58  ;;  %v1058_v3 = vpop.f32.mrb[7].mxu0 }
 0x2fe   :  { %v1062_v44 = vmax.f32 %v1300_v63, 0.0  ;;  %v1302_v4 = vadd.f32 %v1058_v3, %v732_v59 }
 0x2ff   :  { %1065 = vst [vmem:[%s1883_s7] sm:$0xff] %v1061_v1  ;;  %v1063_v5 = vmax.f32 %v1301_v2, 0.0 }
 0x300   :  { %1066 = vst [vmem:[%s1883_s7 + $0x8] sm:$0xff] %v1062_v44  ;;  %v1064_v14 = vmax.f32 %v1302_v4, 0.0 }
 0x301   :  { %1067 = vst [vmem:[%s1883_s7 + $0x10] sm:$0xff] %v1063_v5 }
 0x302   :  { %1068 = vst [vmem:[%s1883_s7 + $0x18] sm:$0xff] %v1064_v14 }

</bundles_post_ra>
